<compile_context>
chip_gen: v5e
topology: v5e:2x2
jax: 0.10.0
libtpu: 0.0.40
codegen_flags: <defaults>
</compile_context>

<pallas_src>
import math

import jax
import jax.numpy as jnp
from jax import lax
from jax.experimental import pallas as pl
from jax.experimental.pallas import tpu as pltpu


_MASK_VALUE = -1e30  # large finite negative; exp(mask - m) underflows to exactly 0


def _tile(dim: int, pref: int) -> int:
    """Full dim if small, else the largest power-of-two-shrunk tile that divides dim."""
    if dim <= pref:
        return dim
    t = pref
    while t > 1 and dim % t != 0:
        t //= 2
    return t if dim % t == 0 else dim


# ---------------------------------------------------------------------------
# Tiled matmul + bias kernel:  out = x @ w + b
# ---------------------------------------------------------------------------
def _linear_bias_kernel(x_ref, w_ref, b_ref, o_ref, acc_ref):
    k = pl.program_id(2)

    @pl.when(k == 0)
    def _init():
        acc_ref[...] = jnp.zeros_like(acc_ref)

    acc_ref[...] += jnp.dot(x_ref[...], w_ref[...],
                            preferred_element_type=jnp.float32)

    @pl.when(k == pl.num_programs(2) - 1)
    def _finalize():
        out = acc_ref[...] + b_ref[...].astype(jnp.float32)   # (1, tn) broadcasts
        o_ref[...] = out.astype(o_ref.dtype)


def _linear(x2d, w_t, b, *, tm_pref=256, tn_pref=256, tk_pref=512):
    """x2d: (M, K), w_t: (K, N), b: (1, N)  ->  (M, N) in x2d.dtype."""
    M, K = x2d.shape
    K2, N = w_t.shape
    assert K == K2 and b.shape == (1, N)
    tm, tn, tk = _tile(M, tm_pref), _tile(N, tn_pref), _tile(K, tk_pref)

    return pl.pallas_call(
        _linear_bias_kernel,
        out_shape=jax.ShapeDtypeStruct((M, N), x2d.dtype),
        grid_spec=pltpu.PrefetchScalarGridSpec(
            num_scalar_prefetch=0,
            grid=(M // tm, N // tn, K // tk),
            in_specs=[
                pl.BlockSpec((tm, tk), lambda i, j, k: (i, k)),
                pl.BlockSpec((tk, tn), lambda i, j, k: (k, j)),
                pl.BlockSpec((1, tn), lambda i, j, k: (0, j)),
            ],
            out_specs=pl.BlockSpec((tm, tn), lambda i, j, k: (i, j)),
            scratch_shapes=[pltpu.VMEM((tm, tn), jnp.float32)],
        ),
        compiler_params=pltpu.CompilerParams(
            dimension_semantics=("parallel", "parallel", "arbitrary"),
            vmem_limit_bytes=32 * 1024 * 1024),
    )(x2d, w_t, b)


# ---------------------------------------------------------------------------
# Flash-attention core: grid = (B*H, q_block, kv_block), online softmax.
# ---------------------------------------------------------------------------
def _flash_kernel(q_ref, k_ref, v_ref, o_ref, m_sc, l_sc, acc_sc):
    tq = q_ref.shape[1]
    tk = k_ref.shape[1]
    hd = q_ref.shape[2]
    qi = pl.program_id(1)
    ki = pl.program_id(2)

    @pl.when(ki == 0)
    def _init():
        m_sc[...] = jnp.full_like(m_sc, _MASK_VALUE)
        l_sc[...] = jnp.zeros_like(l_sc)
        acc_sc[...] = jnp.zeros_like(acc_sc)

    first_q_row = qi * tq
    last_q_row = (qi + 1) * tq - 1
    first_kv_col = ki * tk
    last_kv_col = (ki + 1) * tk - 1

    # Block is needed iff some (row, col) with col <= row exists in it.
    needed = first_kv_col <= last_q_row
    # Block needs no mask iff every col <= every row.
    fully_visible = last_kv_col <= first_q_row

    def _body(apply_mask: bool):
        scale = 1.0 / math.sqrt(hd)
        q = q_ref[0] * scale                              # fold scale into q (tq, hd)
        s = jnp.dot(q, k_ref[0].T,
                    preferred_element_type=jnp.float32)   # (tq, tk), f32 on MXU

        if apply_mask:
            # Element-level causal mask with global row/col offsets (diagonal blocks only).
            row = first_q_row + lax.broadcasted_iota(jnp.int32, (tq, tk), 0)
            col = first_kv_col + lax.broadcasted_iota(jnp.int32, (tq, tk), 1)
            s = jnp.where(col <= row, s, _MASK_VALUE)

        m_prev = m_sc[...]
        m_new = jnp.maximum(m_prev, s.max(axis=-1, keepdims=True))
        alpha = jnp.exp(m_prev - m_new)
        p = jnp.exp(s - m_new)
        l_sc[...] = alpha * l_sc[...] + p.sum(axis=-1, keepdims=True)
        acc_sc[...] = alpha * acc_sc[...] + jnp.dot(
            p.astype(v_ref.dtype), v_ref[0], preferred_element_type=jnp.float32)
        m_sc[...] = m_new

    # Fast path: fully-visible KV block, no iota/compare/select on the VPU.
    @pl.when(needed & fully_visible)
    def _no_mask():
        _body(apply_mask=False)

    # Diagonal-straddling block: pay for the causal mask.
    @pl.when(needed & jnp.logical_not(fully_visible))
    def _with_mask():
        _body(apply_mask=True)

    # Fully-masked blocks (above the diagonal) are skipped entirely.

    @pl.when(ki == pl.num_programs(2) - 1)
    def _finalize():
        inv_l = pl.reciprocal(l_sc[...], approx=True)     # EUP slot, VPU stays free
        o_ref[0] = (acc_sc[...] * inv_l).astype(o_ref.dtype)


def _flash_attention(q, k, v, *, block_q=128, block_k=128):
    """q, k, v: (B*H, T, hd) -> (B*H, T, hd)."""
    BH, T, hd = q.shape
    tq, tk = _tile(T, block_q), _tile(T, block_k)

    return pl.pallas_call(
        _flash_kernel,
        out_shape=jax.ShapeDtypeStruct((BH, T, hd), q.dtype),
        grid_spec=pltpu.PrefetchScalarGridSpec(
            num_scalar_prefetch=0,
            grid=(BH, T // tq, T // tk),
            in_specs=[
                pl.BlockSpec((1, tq, hd), lambda b, qi, ki: (b, qi, 0)),
                pl.BlockSpec((1, tk, hd), lambda b, qi, ki: (b, ki, 0)),
                pl.BlockSpec((1, tk, hd), lambda b, qi, ki: (b, ki, 0)),
            ],
            out_specs=pl.BlockSpec((1, tq, hd), lambda b, qi, ki: (b, qi, 0)),
            scratch_shapes=[
                pltpu.VMEM((tq, 1), jnp.float32),    # running max m
                pltpu.VMEM((tq, 1), jnp.float32),    # running sum l
                pltpu.VMEM((tq, hd), jnp.float32),   # output accumulator
            ],
        ),
        compiler_params=pltpu.CompilerParams(
            dimension_semantics=("parallel", "parallel", "arbitrary"),
            vmem_limit_bytes=32 * 1024 * 1024),
    )(q, k, v)


# ---------------------------------------------------------------------------
# Full forward: qkv projection -> per-head causal attention -> output projection
# ---------------------------------------------------------------------------
def causal_self_attention(x, w_qkv_t, b_qkv, w_proj_t, b_proj, *, n_head,
                          block_q=128, block_k=128):
    """x: (B, T, C). w_qkv_t: (C, 3C). b_qkv: (1, 3C). w_proj_t: (C, C). b_proj: (1, C)."""
    B, T, C = x.shape
    assert C % n_head == 0
    hd = C // n_head

    # 1) qkv projection (Pallas tiled matmul + bias)
    qkv = _linear(x.reshape(B * T, C), w_qkv_t, b_qkv)          # (B*T, 3C)

    # layout plumbing in XLA: (B*T, 3C) -> q/k/v each (B*H, T, hd)
    qkv = qkv.reshape(B, T, 3, n_head, hd)
    q = qkv[:, :, 0].transpose(0, 2, 1, 3).reshape(B * n_head, T, hd)
    k = qkv[:, :, 1].transpose(0, 2, 1, 3).reshape(B * n_head, T, hd)
    v = qkv[:, :, 2].transpose(0, 2, 1, 3).reshape(B * n_head, T, hd)

    # 2) flash-attention core
    y = _flash_attention(q, k, v, block_q=block_q, block_k=block_k)  # (B*H, T, hd)

    # back to (B*T, C) with heads re-interleaved exactly as the torch module
    y = y.reshape(B, n_head, T, hd).transpose(0, 2, 1, 3).reshape(B * T, C)

    # 3) output projection
    out = _linear(y, w_proj_t, b_proj)                          # (B*T, C)
    return out.reshape(B, T, C)


def reference(x, w_qkv_t, b_qkv, w_proj_t, b_proj, n_head):
    """Pure-JAX reference matching the PyTorch forward exactly (f32)."""
    B, T, C = x.shape
    hd = C // n_head
    qkv = x @ w_qkv_t + b_qkv[0]
    q, k, v = jnp.split(qkv, 3, axis=-1)
    q = q.reshape(B, T, n_head, hd).transpose(0, 2, 1, 3)
    k = k.reshape(B, T, n_head, hd).transpose(0, 2, 1, 3)
    v = v.reshape(B, T, n_head, hd).transpose(0, 2, 1, 3)
    att = (q @ jnp.swapaxes(k, -2, -1)) * (1.0 / math.sqrt(hd))
    mask = jnp.tril(jnp.ones((T, T), dtype=bool))
    att = jnp.where(mask[None, None], att, -jnp.inf)
    att = jax.nn.softmax(att, axis=-1)
    y = att @ v
    y = y.transpose(0, 2, 1, 3).reshape(B, T, C)
    return y @ w_proj_t + b_proj[0]


def _make_params(key, C, dtype=jnp.float32):
    k2, k3, k4, k5 = jax.random.split(key, 4)
    # nn.Linear(C, 3C): weight (3C, C), bias (3C,). Pass W^T so the kernel does x @ W^T.
    w_qkv = jax.random.normal(k2, (3 * C, C), dtype=dtype) * (1.0 / math.sqrt(C))
    b_qkv = jax.random.normal(k3, (3 * C,), dtype=dtype) * 0.02
    w_proj = jax.random.normal(k4, (C, C), dtype=dtype) * (1.0 / math.sqrt(C))
    b_proj = jax.random.normal(k5, (C,), dtype=dtype) * 0.02
    return w_qkv.T, b_qkv.reshape(1, 3 * C), w_proj.T, b_proj.reshape(1, C)


if __name__ == "__main__":
    key = jax.random.PRNGKey(0)
    k_small, k_large = jax.random.split(key, 2)

    # ---- Small config (single-block path): B=2, T=8, C=32, n_head=4 ----
    B, T, C, n_head = 2, 8, 32, 4
    kx, kp = jax.random.split(k_small)
    x = jax.random.normal(kx, (B, T, C), dtype=jnp.float32)
    w_qkv_t, b_qkv_2d, w_proj_t, b_proj_2d = _make_params(kp, C)

    ref = reference(x, w_qkv_t, b_qkv_2d, w_proj_t, b_proj_2d, n_head)

    out = causal_self_attention(x, w_qkv_t, b_qkv_2d, w_proj_t, b_proj_2d, n_head=n_head)
    out = jax.block_until_ready(out)
    assert out.shape == (B, T, C)
    assert jnp.allclose(out, ref, atol=5e-3, rtol=5e-3), "f32 mismatch vs reference (small)"

    # bf16 path (MXU-friendly inputs, f32 accumulation inside the kernels; loose check)
    to_bf16 = lambda a: a.astype(jnp.bfloat16)
    out_bf16 = causal_self_attention(
        to_bf16(x), to_bf16(w_qkv_t), to_bf16(b_qkv_2d),
        to_bf16(w_proj_t), to_bf16(b_proj_2d), n_head=n_head)
    out_bf16 = jax.block_until_ready(out_bf16)
    assert out_bf16.shape == (B, T, C)
    assert jnp.allclose(out_bf16.astype(jnp.float32), ref, atol=0.15, rtol=0.15), \
        "bf16 mismatch vs reference (small)"

    # ---- Larger config (exercises multi-block grid, skip + mask-free fast path) ----
    B2, T2, C2, n_head2 = 2, 256, 128, 4
    kx2, kp2 = jax.random.split(k_large)
    x2 = jax.random.normal(kx2, (B2, T2, C2), dtype=jnp.float32)
    w_qkv_t2, b_qkv_2d2, w_proj_t2, b_proj_2d2 = _make_params(kp2, C2)

    ref2 = reference(x2, w_qkv_t2, b_qkv_2d2, w_proj_t2, b_proj_2d2, n_head2)
    out2 = causal_self_attention(x2, w_qkv_t2, b_qkv_2d2, w_proj_t2, b_proj_2d2,
                                 n_head=n_head2)
    out2 = jax.block_until_ready(out2)
    assert out2.shape == (B2, T2, C2)
    assert jnp.allclose(out2, ref2, atol=2e-2, rtol=2e-2), "f32 mismatch vs reference (large)"

    print("KERNEL_OK")
</pallas_src>

<mosaic_0001>
module attributes {stable_mosaic.version = 11 : i64} {
  func.func @_linear_bias_kernel(%arg0: i32, %arg1: i32, %arg2: i32, %arg3: memref<16x32xf32, #tpu.memory_space<vmem>>, %arg4: memref<32x96xf32, #tpu.memory_space<vmem>>, %arg5: memref<1x96xf32, #tpu.memory_space<vmem>>, %arg6: memref<16x96xf32, #tpu.memory_space<vmem>>, %arg7: memref<16x96xf32, #tpu.memory_space<vmem>>) attributes {dimension_semantics = [#tpu.dimension_semantics<parallel>, #tpu.dimension_semantics<parallel>, #tpu.dimension_semantics<arbitrary>], iteration_bounds = array<i64: 1, 1, 1>, scalar_prefetch = 0 : i64, scratch_operands = 1 : i64, tpu.core_type = #tpu.core_type<tc>, window_params = [{transform_indices = @transform_0, window_bounds = array<i64: 16, 32>}, {transform_indices = @transform_1, window_bounds = array<i64: 32, 96>}, {transform_indices = @transform_2, window_bounds = array<i64: 1, 96>}, {transform_indices = @transform_3, window_bounds = array<i64: 16, 96>}]} {
    %c0_i32 = arith.constant 0 : i32
    %0 = arith.cmpi eq, %arg2, %c0_i32 : i32
    %1 = arith.extui %0 : i1 to i32
    %c0_i32_0 = arith.constant 0 : i32
    %2 = arith.cmpi ne, %1, %c0_i32_0 : i32
    scf.if %2 {
      %cst_10 = arith.constant 0.000000e+00 : f32
      %12 = vector.broadcast %cst_10 : f32 to vector<16x96xf32>
      %c0_11 = arith.constant 0 : index
      %c0_12 = arith.constant 0 : index
      %13 = vector.load %arg7[%c0_11, %c0_12] : memref<16x96xf32, #tpu.memory_space<vmem>>, vector<16x96xf32>
      tpu.vector_store %arg7[%c0_11, %c0_12], %12 {strides = array<i32>} : memref<16x96xf32, #tpu.memory_space<vmem>>, vector<16x96xf32>,
    } else {
    }
    %c0 = arith.constant 0 : index
    %c0_1 = arith.constant 0 : index
    %3 = vector.load %arg7[%c0, %c0_1] : memref<16x96xf32, #tpu.memory_space<vmem>>, vector<16x96xf32>
    %c0_2 = arith.constant 0 : index
    %c0_3 = arith.constant 0 : index
    %4 = vector.load %arg3[%c0_2, %c0_3] : memref<16x32xf32, #tpu.memory_space<vmem>>, vector<16x32xf32>
    %c0_4 = arith.constant 0 : index
    %c0_5 = arith.constant 0 : index
    %5 = vector.load %arg4[%c0_4, %c0_5] : memref<32x96xf32, #tpu.memory_space<vmem>>, vector<32x96xf32>
    %cst = arith.constant dense<0.000000e+00> : vector<16x96xf32>
    %6 = tpu.matmul %4, %5, %cst {dimension_numbers = #tpu.dot_dimension_numbers<[1], [0], [0], [1], [0, 0, 1, 1], [], []>} : vector<16x32xf32>, vector<32x96xf32>, vector<16x96xf32> -> vector<16x96xf32>
    %7 = arith.addf %3, %6 : vector<16x96xf32>
    %c0_6 = arith.constant 0 : index
    %c0_7 = arith.constant 0 : index
    %8 = vector.load %arg7[%c0_6, %c0_7] : memref<16x96xf32, #tpu.memory_space<vmem>>, vector<16x96xf32>
    tpu.vector_store %arg7[%c0_6, %c0_7], %7 {strides = array<i32>} : memref<16x96xf32, #tpu.memory_space<vmem>>, vector<16x96xf32>,
    %c0_i32_8 = arith.constant 0 : i32
    %9 = arith.cmpi eq, %arg2, %c0_i32_8 : i32
    %10 = arith.extui %9 : i1 to i32
    %c0_i32_9 = arith.constant 0 : i32
    %11 = arith.cmpi ne, %10, %c0_i32_9 : i32
    scf.if %11 {
      %c0_10 = arith.constant 0 : index
      %c0_11 = arith.constant 0 : index
      %12 = vector.load %arg7[%c0_10, %c0_11] : memref<16x96xf32, #tpu.memory_space<vmem>>, vector<16x96xf32>
      %c0_12 = arith.constant 0 : index
      %c0_13 = arith.constant 0 : index
      %13 = vector.load %arg5[%c0_12, %c0_13] : memref<1x96xf32, #tpu.memory_space<vmem>>, vector<1x96xf32>
      %14 = vector.broadcast %13 : vector<1x96xf32> to vector<16x96xf32>
      %15 = arith.addf %12, %14 : vector<16x96xf32>
      %c0_14 = arith.constant 0 : index
      %c0_15 = arith.constant 0 : index
      %16 = vector.load %arg6[%c0_14, %c0_15] : memref<16x96xf32, #tpu.memory_space<vmem>>, vector<16x96xf32>
      tpu.vector_store %arg6[%c0_14, %c0_15], %15 {strides = array<i32>} : memref<16x96xf32, #tpu.memory_space<vmem>>, vector<16x96xf32>,
    } else {
    }
    return
  }
  func.func @transform_0(%arg0: i32, %arg1: i32, %arg2: i32) -> (i32, i32) {
    %c0_i32 = arith.constant 0 : i32
    return %arg0, %arg2 : i32, i32
  }
  func.func @transform_1(%arg0: i32, %arg1: i32, %arg2: i32) -> (i32, i32) {
    %c0_i32 = arith.constant 0 : i32
    return %arg2, %arg1 : i32, i32
  }
  func.func @transform_2(%arg0: i32, %arg1: i32, %arg2: i32) -> (i32, i32) {
    %c0_i32 = arith.constant 0 : i32
    %c0_i32_0 = arith.constant 0 : i32
    return %c0_i32, %arg1 : i32, i32
  }
  func.func @transform_3(%arg0: i32, %arg1: i32, %arg2: i32) -> (i32, i32) {
    %c0_i32 = arith.constant 0 : i32
    return %arg0, %arg1 : i32, i32
  }
}

</mosaic_0001>

<bundles_post_ra>
// kernel: tpu_custom_call.1
= control target key start
LH: loop header
LB: loop body
LE: loop exit
PB: predicated region body
PF: predicated region fallthrough
CT: control target
= control target key end

     0   :  { %8 = vsyncpa [#allocation4], 0  ;;  %s274_s0 = inlined_call_operand.hbm [shape: f32[16,32], index: 0, kind: input, shape index: {}]   ;;  %s275_s1 = inlined_call_operand.hbm [shape: f32[32,96], index: 1, kind: input, shape index: {}]   ;;  %s276_s2 = inlined_call_operand.vmem [shape: f32[1,96], index: 2, kind: input, shape index: {}]   ;;  %s277_s3 = inlined_call_operand.hbm [shape: f32[16,96], index: 3, kind: output, shape index: {}]  }
   0x1   :  { %9 = vsyncpa [#allocation7], 0 }
   0x2   :  { %10 = vsyncpa [#allocation5], 0  ;;  %s15_s14 = sshll.u32 %s274_s0, 4  ;;  %s221_s15 = smov [#allocation3]   ;;  %s16_s14 = int_to_ptr.hbm [resolvable:$true] %s15_s14 }
   0x3   :  { %s17_s16 = sshll.u32 %s221_s15, 4  ;;  %s28_s19 = sshll.u32 %s275_s1, 4  ;;  %s18_s16 = int_to_ptr.vmem [resolvable:$true] %s17_s16  ;;  %s29_s19 = int_to_ptr.hbm [resolvable:$true] %s28_s19 }
   0x4   :  { %s222_s20 = smov 128   ;;  %s223_s21 = smov 8  }
   0x5   :  { %23 = dma.hbm_to_vmem [thread:$0]  %s16_s14, 256, %s18_s16, [#allocation4], %s222_s20, %s222_s20, %s223_s21  }
   0x6   :  { %s224_s22 = smov [#allocation6]  }
   0x7   :  { %s30_s23 = sshll.u32 %s224_s22, 4  ;;  %s31_s23 = int_to_ptr.vmem [resolvable:$true] %s30_s23 }
   0x8   :  { %36 = dma.hbm_to_vmem [thread:$0]  %s29_s19, 512, %s31_s23, [#allocation7], %s222_s20, %s222_s20, %s223_s21  }
   0x9   :  { %215 = dma.done.wait [#allocation4], 256  }
   0xa   :  { %216 = vsyncadd [#allocation4], 4294967040 }
   0xb   :  { %217 = dma.done.wait [#allocation7], 512  }
   0xc   :  { %218 = vsyncadd [#allocation7], 4294966784  ;;  %vm51_vm0 = vcmask 785408   ;;  %v225_v0 = vmov 0.0   ;;  %v61_v1 = vld [vmem:[#allocation6 + $0x18] sm:$0xff]  ;;  %v60_v2 = vld [vmem:[#allocation6 + $0x10] sm:$0xff] }
   0xd   :  { %52 = vst.msk [vmem:[#allocation2] sm:$0xff] %vm51_vm0, %v225_v0  ;;  %81 = vmatpush.msra.mxu0 %v61_v1  ;;  %132 = vmatpush.msra.mxu1 %v61_v1  ;;  %v59_v3 = vld [vmem:[#allocation6 + $0x8] sm:$0xff]  ;;  %v58_v4 = vld [vmem:[#allocation6] sm:$0xff]  ;;  %v56_v5 = vld [vmem:[#allocation3] sm:$0xff]  ;;  %vm62_vm1 = vcmask 261120   ;;  %s226_s24 = smov [#allocation8]  }
   0xe   :  { %53 = vst.msk [vmem:[#allocation2 + $0x8] sm:$0xff] %vm51_vm0, %v225_v0  ;;  %v57_v6 = vld [vmem:[#allocation3 + $0x8] sm:$0xff]  ;;  %v142_v13 = vld [vmem:[%s276_s2] ss:$0 sm:$0xff]  ;;  %s114_s25 = sshll.u32 %s226_s24, 4  ;;  %s116_s28 = sshll.u32 %s277_s3, 4  ;;  %s115_s25 = int_to_ptr.vmem [resolvable:$true] %s114_s25  ;;  %s117_s28 = int_to_ptr.hbm [resolvable:$true] %s116_s28 }
   0xf   :  { %82 = vmatpush.msra.mxu0 %v60_v2  ;;  %133 = vmatpush.msra.mxu1 %v60_v2 }
  0x11   :  { %83 = vmatpush.msra.mxu0 %v59_v3  ;;  %134 = vmatpush.msra.mxu1 %v59_v3 }
  0x13   :  { %84 = vmatpush.msra.mxu0 %v58_v4  ;;  %135 = vmatpush.msra.mxu1 %v58_v4 }
  0x14   :  { %130 = vmatmul.msk.f32.vlgmr.msra.gmra.mxu0 %vm62_vm1, %v56_v5  ;;  %131 = vmatmul.msk.f32.vlgmr.msra.gmra.mxu1 %vm62_vm1, %v57_v6  ;;  %v54_v7 = vld [vmem:[#allocation2] sm:$0xff] }
  0x15   :  { %v55_v8 = vld [vmem:[#allocation2 + $0x8] sm:$0xff] }
  0x91   :  { %v86_v9 = vpop.f32.mrf.mxu0  ;;  %v89_v10 = vpop.f32.mrf.mxu1 }
  0x92   :  { %v92_v11 = vadd.f32 %v86_v9, %v54_v7  ;;  %v93_v12 = vadd.f32 %v89_v10, %v55_v8 }
  0x94   :  { %95 = vst.msk [vmem:[#allocation2] sm:$0xff] %vm51_vm0, %v92_v11 }
  0x95   :  { %96 = vst.msk [vmem:[#allocation2 + $0x8] sm:$0xff] %vm51_vm0, %v93_v12 }
  0x9b   :  { %v100_v14 = vld [vmem:[#allocation2] sm:$0xff] }
  0x9c   :  { %v101_v15 = vld [vmem:[#allocation2 + $0x8] sm:$0xff]  ;;  %v106_v16 = vadd.f32 %v142_v13, %v100_v14 }
  0x9d   :  { %v107_v17 = vadd.f32 %v142_v13, %v101_v15 }
  0x9e   :  { %108 = vst.msk [vmem:[#allocation8] sm:$0xff] %vm51_vm0, %v106_v16 }
  0x9f   :  { %109 = vst.msk [vmem:[#allocation8 + $0x8] sm:$0xff] %vm51_vm0, %v107_v17 }
  0xa0   :  { %122 = dma.vmem_to_hbm [thread:$0]  %s115_s25, 256, %s117_s28, [#allocation5], %s222_s20, %s222_s20, %s223_s21  }
  0xa1   :  { %219 = dma.done.wait [#allocation5], 256  }
  0xa2   :  { %220 = vsyncadd [#allocation5], 4294967040 }
  0xa3   :  { %127 = vsyncpa [#allocation4], 1 }
  0xa4   :  { %128 = vsyncpa [#allocation7], 1 }
  0xa5   :  { %129 = vsyncpa [#allocation5], 1 }

</bundles_post_ra>
